<compile_context>
chip_gen: v7x
topology: tpu7x:2x2x1
jax: 0.10.0
libtpu: 0.0.40
codegen_flags: <defaults>
</compile_context>

<pallas_src>
import jax
import jax.numpy as jnp
from jax.experimental import pallas as pl
from jax.experimental.pallas import tpu as pltpu


def _se_kernel(x_ref, w1_ref, b1_ref, w2_ref, b2_ref, o_ref):
    # x_ref block: (nb, C, HW); w1 (R, C); b1 (R, 1); w2 (C, R); b2 (C, 1)
    nb = x_ref.shape[0]
    hw = x_ref.shape[2]
    inv_hw = 1.0 / hw
    # Hoist weight loads out of the unrolled per-image loop.
    w1 = w1_ref[...]
    b1 = b1_ref[...]
    w2 = w2_ref[...]
    b2 = b2_ref[...]
    for i in range(nb):  # nb is small and static -> fully unrolled
        xi = x_ref[i]                                                           # (C, HW)
        # AdaptiveAvgPool2d(1): mean over spatial (lane) axis, f32 accumulation.
        pooled = jnp.sum(xi.astype(jnp.float32), axis=-1, keepdims=True) * inv_hw  # (C, 1)
        # Conv2d(C, R, 1): W1 @ pooled + b1
        h = jnp.dot(w1, pooled, preferred_element_type=jnp.float32) + b1        # (R, 1)
        h = h * jax.nn.sigmoid(h)                                               # Swish
        # Conv2d(R, C, 1): W2 @ h + b2
        s = jnp.dot(w2, h, preferred_element_type=jnp.float32) + b2             # (C, 1)
        s = jax.nn.sigmoid(s).astype(xi.dtype)
        # x * se(x): (C,1) broadcast over spatial positions (lanes) -> full-width stores.
        o_ref[i] = (xi * s).astype(o_ref.dtype)


def _pick_images_per_block(n, slab_bytes, target_bytes=8 << 20, max_unroll=8):
    """Largest divisor nb of n with nb*slab <= target, nb <= max_unroll,
    keeping >=2 grid steps when possible (megacore / v7x 2-TC sharding)."""
    cap = max(1, min(n, max_unroll, target_bytes // max(slab_bytes, 1)))
    if n >= 2:
        cap = min(cap, max(1, n // 2))
    nb = 1
    for d in range(1, cap + 1):
        if n % d == 0:
            nb = d
    return nb


def squeeze_excitation(x_nchw, w1, b1, w2, b2):
    """x_nchw: (N, C, H, W); w1: (R, C), b1: (R,), w2: (C, R), b2: (C,)."""
    N, C, H, W = x_nchw.shape
    R = w1.shape[0]
    HW = H * W

    x = x_nchw.reshape(N, C, HW)             # free reshape, NCHW-native layout
    b1c = b1.reshape(R, 1)
    b2c = b2.reshape(C, 1)

    slab_bytes = C * HW * x.dtype.itemsize   # one image's activation slab
    nb = _pick_images_per_block(N, slab_bytes)
    block_bytes = nb * slab_bytes
    weight_bytes = (R * C + C * R + R + C) * 4
    # in + out blocks, double buffered, plus weights and margin.
    # TODO(synk): for very large feature maps (per-image slab > ~14 MiB) switch to an
    # HW-tiled two-pass (pool+MLP, then scale) design so it fits v7x's 64 MiB VMEM.
    vmem_limit = int(min(max(4 * block_bytes + weight_bytes + (2 << 20), 32 << 20), 64 << 20))

    out = pl.pallas_call(
        _se_kernel,
        out_shape=jax.ShapeDtypeStruct((N, C, HW), x.dtype),
        grid_spec=pltpu.PrefetchScalarGridSpec(
            num_scalar_prefetch=0,
            grid=(N // nb,),
            in_specs=[
                pl.BlockSpec((nb, C, HW), lambda i: (i, 0, 0)),
                pl.BlockSpec((R, C), lambda i: (0, 0)),
                pl.BlockSpec((R, 1), lambda i: (0, 0)),
                pl.BlockSpec((C, R), lambda i: (0, 0)),
                pl.BlockSpec((C, 1), lambda i: (0, 0)),
            ],
            out_specs=pl.BlockSpec((nb, C, HW), lambda i: (i, 0, 0)),
        ),
        compiler_params=pltpu.CompilerParams(
            dimension_semantics=("parallel",),
            vmem_limit_bytes=vmem_limit),
    )(x, w1, b1c, w2, b2c)

    return out.reshape(N, C, H, W)


def _reference(x, w1, b1, w2, b2):
    pooled = jnp.mean(x, axis=(2, 3), keepdims=True)                  # (N, C, 1, 1)
    h = jnp.einsum('nchw,rc->nrhw', pooled, w1) + b1[None, :, None, None]
    h = h * jax.nn.sigmoid(h)
    s = jnp.einsum('nrhw,cr->nchw', h, w2) + b2[None, :, None, None]
    s = jax.nn.sigmoid(s)
    return x * s


if __name__ == "__main__":
    key = jax.random.PRNGKey(0)
    N, C, H, W = 2, 32, 16, 16
    R = 8  # reduced_dim

    k_x, k_w1, k_b1, k_w2, k_b2 = jax.random.split(key, 5)
    x = jax.random.normal(k_x, (N, C, H, W), dtype=jnp.float32)

    # 1x1 conv weights reshaped to (out, in), uniform(-1/sqrt(fan_in), 1/sqrt(fan_in))
    lim1 = 1.0 / (C ** 0.5)
    lim2 = 1.0 / (R ** 0.5)
    w1 = jax.random.uniform(k_w1, (R, C), jnp.float32, -lim1, lim1)
    b1 = jax.random.uniform(k_b1, (R,), jnp.float32, -lim1, lim1)
    w2 = jax.random.uniform(k_w2, (C, R), jnp.float32, -lim2, lim2)
    b2 = jax.random.uniform(k_b2, (C,), jnp.float32, -lim2, lim2)

    out = squeeze_excitation(x, w1, b1, w2, b2)
    out = jax.block_until_ready(out)

    ref = _reference(x, w1, b1, w2, b2)
    assert out.shape == (N, C, H, W)
    assert jnp.allclose(out, ref, atol=1e-5, rtol=1e-5), "mismatch vs reference"
    print("KERNEL_OK")
</pallas_src>

<mosaic_0001>
module attributes {stable_mosaic.version = 11 : i64} {
  func.func @_se_kernel(%arg0: i32, %arg1: memref<1x32x256xf32, #tpu.memory_space<vmem>>, %arg2: memref<8x32xf32, #tpu.memory_space<vmem>>, %arg3: memref<8x1xf32, #tpu.memory_space<vmem>>, %arg4: memref<32x8xf32, #tpu.memory_space<vmem>>, %arg5: memref<32x1xf32, #tpu.memory_space<vmem>>, %arg6: memref<1x32x256xf32, #tpu.memory_space<vmem>>) attributes {dimension_semantics = [#tpu.dimension_semantics<parallel>], iteration_bounds = array<i64: 2>, scalar_prefetch = 0 : i64, scratch_operands = 0 : i64, tpu.core_type = #tpu.core_type<tc>, window_params = [{transform_indices = @transform_0, window_bounds = array<i64: 1, 32, 256>}, {pipeline_mode = #tpu.pipeline_mode<synchronous>, transform_indices = @transform_1, window_bounds = array<i64: 8, 32>}, {pipeline_mode = #tpu.pipeline_mode<synchronous>, transform_indices = @transform_2, window_bounds = array<i64: 8, 1>}, {pipeline_mode = #tpu.pipeline_mode<synchronous>, transform_indices = @transform_3, window_bounds = array<i64: 32, 8>}, {pipeline_mode = #tpu.pipeline_mode<synchronous>, transform_indices = @transform_4, window_bounds = array<i64: 32, 1>}, {transform_indices = @transform_5, window_bounds = array<i64: 1, 32, 256>}]} {
    %c0 = arith.constant 0 : index
    %c0_0 = arith.constant 0 : index
    %0 = vector.load %arg2[%c0, %c0_0] : memref<8x32xf32, #tpu.memory_space<vmem>>, vector<8x32xf32>
    %c0_1 = arith.constant 0 : index
    %c0_2 = arith.constant 0 : index
    %1 = vector.load %arg3[%c0_1, %c0_2] : memref<8x1xf32, #tpu.memory_space<vmem>>, vector<8x1xf32>
    %c0_3 = arith.constant 0 : index
    %c0_4 = arith.constant 0 : index
    %2 = vector.load %arg4[%c0_3, %c0_4] : memref<32x8xf32, #tpu.memory_space<vmem>>, vector<32x8xf32>
    %c0_5 = arith.constant 0 : index
    %c0_6 = arith.constant 0 : index
    %3 = vector.load %arg5[%c0_5, %c0_6] : memref<32x1xf32, #tpu.memory_space<vmem>>, vector<32x1xf32>
    %c0_7 = arith.constant 0 : index
    %c0_8 = arith.constant 0 : index
    %c0_9 = arith.constant 0 : index
    %4 = vector.load %arg1[%c0_7, %c0_8, %c0_9] : memref<1x32x256xf32, #tpu.memory_space<vmem>>, vector<1x32x256xf32>
    %5 = vector.shape_cast %4 : vector<1x32x256xf32> to vector<32x256xf32>
    %cst = arith.constant dense<0.000000e+00> : vector<32xf32>
    %6 = vector.multi_reduction <add>, %5, %cst [1] : vector<32x256xf32> to vector<32xf32>
    %7 = vector.shape_cast %6 : vector<32xf32> to vector<32x1xf32>
    %cst_10 = arith.constant 3.906250e-03 : f32
    %8 = vector.broadcast %cst_10 : f32 to vector<32x1xf32>
    %9 = arith.mulf %7, %8 : vector<32x1xf32>
    %cst_11 = arith.constant dense<0.000000e+00> : vector<8x1xf32>
    %10 = tpu.matmul %0, %9, %cst_11 {dimension_numbers = #tpu.dot_dimension_numbers<[1], [0], [0], [1], [0, 0, 1, 1], [], []>} : vector<8x32xf32>, vector<32x1xf32>, vector<8x1xf32> -> vector<8x1xf32>
    %11 = arith.addf %10, %1 : vector<8x1xf32>
    %12 = arith.negf %11 : vector<8x1xf32>
    %13 = math.exp %12 : vector<8x1xf32>
    %cst_12 = arith.constant 1.000000e+00 : f32
    %14 = vector.broadcast %cst_12 : f32 to vector<8x1xf32>
    %15 = arith.addf %14, %13 : vector<8x1xf32>
    %16 = arith.divf %14, %15 : vector<8x1xf32>
    %17 = arith.mulf %11, %16 : vector<8x1xf32>
    %cst_13 = arith.constant dense<0.000000e+00> : vector<32x1xf32>
    %18 = tpu.matmul %2, %17, %cst_13 {dimension_numbers = #tpu.dot_dimension_numbers<[1], [0], [0], [1], [0, 0, 1, 1], [], []>} : vector<32x8xf32>, vector<8x1xf32>, vector<32x1xf32> -> vector<32x1xf32>
    %19 = arith.addf %18, %3 : vector<32x1xf32>
    %20 = arith.negf %19 : vector<32x1xf32>
    %21 = math.exp %20 : vector<32x1xf32>
    %cst_14 = arith.constant 1.000000e+00 : f32
    %22 = vector.broadcast %cst_14 : f32 to vector<32x1xf32>
    %23 = arith.addf %22, %21 : vector<32x1xf32>
    %24 = arith.divf %22, %23 : vector<32x1xf32>
    %25 = vector.broadcast %24 : vector<32x1xf32> to vector<32x256xf32>
    %26 = arith.mulf %5, %25 : vector<32x256xf32>
    %c0_15 = arith.constant 0 : index
    %c0_16 = arith.constant 0 : index
    %c0_17 = arith.constant 0 : index
    %27 = vector.load %arg6[%c0_15, %c0_16, %c0_17] : memref<1x32x256xf32, #tpu.memory_space<vmem>>, vector<1x32x256xf32>
    %28 = vector.shape_cast %27 : vector<1x32x256xf32> to vector<32x256xf32>
    %29 = vector.shape_cast %26 : vector<32x256xf32> to vector<1x32x256xf32>
    tpu.vector_store %arg6[%c0_15, %c0_16, %c0_17], %29 {strides = array<i32>} : memref<1x32x256xf32, #tpu.memory_space<vmem>>, vector<1x32x256xf32>,
    return
  }
  func.func @transform_0(%arg0: i32) -> (i32, i32, i32) {
    %c0_i32 = arith.constant 0 : i32
    %c0_i32_0 = arith.constant 0 : i32
    %c0_i32_1 = arith.constant 0 : i32
    return %arg0, %c0_i32, %c0_i32_0 : i32, i32, i32
  }
  func.func @transform_1(%arg0: i32) -> (i32, i32) {
    %c0_i32 = arith.constant 0 : i32
    %c0_i32_0 = arith.constant 0 : i32
    %c0_i32_1 = arith.constant 0 : i32
    return %c0_i32, %c0_i32_0 : i32, i32
  }
  func.func @transform_2(%arg0: i32) -> (i32, i32) {
    %c0_i32 = arith.constant 0 : i32
    %c0_i32_0 = arith.constant 0 : i32
    %c0_i32_1 = arith.constant 0 : i32
    return %c0_i32, %c0_i32_0 : i32, i32
  }
  func.func @transform_3(%arg0: i32) -> (i32, i32) {
    %c0_i32 = arith.constant 0 : i32
    %c0_i32_0 = arith.constant 0 : i32
    %c0_i32_1 = arith.constant 0 : i32
    return %c0_i32, %c0_i32_0 : i32, i32
  }
  func.func @transform_4(%arg0: i32) -> (i32, i32) {
    %c0_i32 = arith.constant 0 : i32
    %c0_i32_0 = arith.constant 0 : i32
    %c0_i32_1 = arith.constant 0 : i32
    return %c0_i32, %c0_i32_0 : i32, i32
  }
  func.func @transform_5(%arg0: i32) -> (i32, i32, i32) {
    %c0_i32 = arith.constant 0 : i32
    %c0_i32_0 = arith.constant 0 : i32
    %c0_i32_1 = arith.constant 0 : i32
    return %arg0, %c0_i32, %c0_i32_0 : i32, i32, i32
  }
}

</mosaic_0001>

<bundles_post_ra>
// kernel: tpu_custom_call.1
= control target key start
LH: loop header
LB: loop body
LE: loop exit
PB: predicated region body
PF: predicated region fallthrough
CT: control target
= control target key end

     0   :  { %10 = vsyncpa [#allocation3], 0  ;;  %s1110_s0 = inlined_call_operand.hbm [shape: f32[2,32,256], index: 0, kind: input, shape index: {}]   ;;  %s1111_s1 = inlined_call_operand.vmem [shape: f32[8,32], index: 1, kind: input, shape index: {}]   ;;  %s1112_s2 = inlined_call_operand.vmem [shape: f32[8,1], index: 2, kind: input, shape index: {}]   ;;  %s1113_s3 = inlined_call_operand.vmem [shape: f32[32,8], index: 3, kind: input, shape index: {}]   ;;  %s1114_s4 = inlined_call_operand.vmem [shape: f32[32,1], index: 4, kind: input, shape index: {}]   ;;  %s1115_s5 = inlined_call_operand.hbm [shape: f32[2,32,256], index: 5, kind: output, shape index: {}]  }
   0x1   :  { %12 = vsyncpa [#allocation3 + $0x1], 0 }
   0x2   :  { %13 = vsyncpa [#allocation4], 0 }
   0x3   :  { %15 = vsyncpa [#allocation4 + $0x1], 0  ;;  %s878_s18 = smov 0   ;;  %s880_s19 = smov 0  }
   0x4   :  { %s882_s20 = smov 0   ;;  %s884_s21 = smov 0  }
   0x5 LB: > { %s899_s22 = sadd.s32 4294967295, %s836_s21   ;;  %s603_s23 = sadd.s32 4294967294, %s836_s21   ;;  %s836_s21 = sphi %s884_s21, %s1128_s21   ;;  %s832_s20 = sphi %s882_s20, %s1127_s20   ;;  %s828_s19 = sphi %s880_s19, %s1126_s19   ;;  %s824_s18 = sphi %s878_s18, %s1125_s18  }
   0x6   : > { %s903_s24 = sadd.s32 1, %s836_s21   ;;  %s28_s25 = sadd.s32 1, %s832_s20 }
   0x7   : > { %s25_s26 = ssub.s32 %s836_s21, %s903_s24  ;;  %p35_p0 = scmp.ne.s32.totalorder %s832_s20, %s828_s19 }
   0x8   : > { %p26_p1 = scmp.eq.s32.totalorder %s25_s26, 0  ;;  %p36_p2 = scmp.eq.s32.totalorder %s836_s21, 0 }
   0x9   : > { %p41_p3 = scmp.ne.s32.totalorder %s828_s19, %s824_s18  ;;  %p42_p4 = scmp.eq.s32.totalorder %s899_s22, 0 }
   0xa   : > { %s915_s27 = scalar_select %p26_p1, %s832_s20, %s28_s25  }
   0xb   : > { %p917_p5 = por %p36_p2, %p35_p0  ;;  %p921_p6 = por %p42_p4, %p41_p3 }
   0xc   : > { %p149_p7 = scmp.eq.s32.totalorder %s899_s22, 1  ;;  %p155_p8 = scmp.eq.s32.totalorder %s603_s23, 1 }
   0xd   : > { %p676_p10 = scmp.lt.s32.totalorder %s836_s21, 2  ;;  %s187_s7 = sand.u32 1, %s832_s20  }
   0xe   : > { %p928_p11 = por %p149_p7, %p35_p0  ;;  %p932_p12 = por %p155_p8, %p41_p3 }
   0xf   : > { %s627_s8 = sshll.u32 %s836_s21, 10  ;;  %s606_s9 = sshll.u32 %s187_s7, 6 }
  0x10   : > { %s1119_s30 = scalar_select %p928_p11, 1, 0 }
  0x11   : > { %s1120_s6 = scalar_select %p932_p12, 1, 0 }
  0x12   : > { %s941_s12 = scalar_lea.hbm %s1110_s0, %s627_s8  ;;  %s191_s13 = scalar_lea.vmem [#allocation2], %s606_s9 }
  0x13   : > { %s198_s14 = sshll.u32 %s191_s13, 4  ;;  %p945_p13 = pnand %p676_p10, %p917_p5  ;;  %s949_s14 = int_to_ptr.vmem [resolvable:$true] %s198_s14 }
  0x14   : > { %s951_s16 = scalar_lea.sflag [#allocation3], %s187_s7  ;;  %s740_s17 = scalar_lea.hbm %s941_s12, 1024 }
  0x15   : > { %p741_p0 = scmp.ne.s32.totalorder %s941_s12, %s740_s17  ;;  %p742_p1 = pneg %p945_p13 }
  0x16   : > { %s745_s26 = scalar_lea.hbm %s1110_s0, 2048  ;;  %p746_p4 = scmp.lt.u32.totalorder %s941_s12, %s1110_s0 }
  0x17   : > { %p743_p2 = pnand %p742_p1, %p741_p0  ;;  %p747_p5 = scmp.lt.u32.totalorder %s745_s26, %s740_s17 }
  0x18   : > { %p749_p8 = scmp.lt.u32.totalorder %s740_s17, %s941_s12 }
  0x19   : > { %p744_p3 = pneg %p743_p2  ;;  %p748_p7 = por %p747_p5, %p746_p4 }
  0x1b   : > { %p750_p10 = por %p749_p8, %p748_p7 }
  0x1d   : > { %p751_p9 = pnand %p750_p10, %p744_p3 }
  0x1f   : > { %754 = shalt.err (!%p751_p9)
}
  0x20   : > { %s755_s7 = scalar_lea.vmem %s949_s14, 1024  ;;  %s838_s9 = smov [#allocation2]  }
  0x21   : > { %p756_p0 = scmp.ne.s32.totalorder %s949_s14, %s755_s7  ;;  %s760_s10 = sshll.u32 %s838_s9, 4  ;;  %s761_s10 = int_to_ptr.vmem [resolvable:$false] %s760_s10 }
  0x22   : > { %s762_s11 = scalar_lea.vmem %s761_s10, 2048  ;;  %p763_p11 = scmp.lt.s32.totalorder %s949_s14, %s761_s10 }
  0x23   : > { %p758_p2 = pnand %p756_p0, %p742_p1  ;;  %p764_p4 = scmp.lt.s32.totalorder %s762_s11, %s755_s7 }
  0x25   : > { %p759_p12 = pneg %p758_p2  ;;  %p765_p5 = por %p764_p4, %p763_p11 }
  0x27   : > { %p766_p7 = pnand %p765_p5, %p759_p12 }
  0x29   : > { %769 = shalt.err (!%p766_p7)
}
  0x2a   : > { %s839_s13 = smov 256   ;;  %s840_s17 = smov 16  }
  0x2b   : > { %671 = dma.hbm_to_vmem [thread:$0]  (!%p945_p13), %s941_s12, 1024, %s949_s14, %s951_s16, %s839_s13, %s839_s13, %s840_s17  }
  0x2c   : > { %p609_p9 = scmp.ge.s32.totalorder %s836_s21, 1  ;;  %p206_p1 = scmp.lt.s32.totalorder %s836_s21, 3 }
  0x2e   : > { %p207_p3 = pnand %p609_p9, %p206_p1 }
  0x2f   : > { %s982_s23 = sand.u32 (!%p207_p3), 1, %s828_s19  }
  0x30   : > { %210 = sbr.rel (%p207_p3) target bundleno = 855 (0x357), region = 40  ;;  %s610_s25 = sshll.u32 (!%p207_p3), %s982_s23, 6 }
  0x31   : > { %s213_s26 = scalar_lea.sflag (!%p207_p3), [#allocation3], %s982_s23  ;;  %s216_s28 = scalar_lea.vmem (!%p207_p3), [#allocation2], %s610_s25 }
  0x37   : > { %815 = dma.done.wait (%p921_p6), %s213_s26, 1024  }
  0x38   : > { %817 = vsyncadd (%p921_p6), %s213_s26, 4294966272  ;;  %v992_v0 = vld [vmem:[%s216_s28 + $0x20] sm:$0xff]  ;;  %v994_v1 = vld [vmem:[%s216_s28 + $0x28] sm:$0xff]  ;;  %v841_v12 = vmov 0.0|0.0   ;;  %vm842_vm0 = vmmov 0   ;;  %v843_v13 = vmov 0.0  }
  0x39   : > { %v996_v2 = vld [vmem:[%s216_s28] sm:$0xff]  ;;  %v267_v3 = vadd.f32 %v994_v1, %v992_v0  ;;  %v1000_v4 = vld [vmem:[%s216_s28 + $0x8] sm:$0xff]  ;;  %v1002_v5 = vld [vmem:[%s216_s28 + $0x30] sm:$0xff]  ;;  %658 = vmatprep.subr.bf16.mxu0 %v841_v12  ;;  %647 = vmatprep.mubr.msk.f32.mxu0 %vm842_vm0, %v843_v13  ;;  %vm277_vm1 = vcmask 261120   ;;  %vm358_vm2 = vcmask 64512   ;;  %v844_v38 = vmov 0  }
  0x3a   : > { %v1004_v6 = vld [vmem:[%s216_s28 + $0x38] sm:$0xff]  ;;  %v261_v7 = vadd.f32 %v1000_v4, %v996_v2  ;;  %v1008_v8 = vld [vmem:[%s216_s28 + $0x10] sm:$0xff]  ;;  %v243_v24 = vld [vmem:[%s1111_s1] sm:$0xff]  ;;  %719 = vset.pattern.permute.xlu1 %v844_v38  ;;  %718 = vset.pattern.permute.xlu0 %v844_v38  ;;  %s242_s7 = scalar_lea.vmem [#allocation5], %s610_s25  ;;  %s628_s10 = sshll.u32 %s899_s22, 10 }
  0x3b   : > { %v1010_v9 = vld [vmem:[%s216_s28 + $0x18] sm:$0xff]  ;;  %268 = vadd.xlane.f32.xlu1 %v267_v3  ;;  %v270_v10 = vadd.f32 %v1004_v6, %v1002_v5  ;;  %v245_v25 = vld [vmem:[%s1113_s3] sm:$0xff]  ;;  %v246_v35 = vld [vmem:[%s1113_s3 + $0x8] sm:$0xff]  ;;  %s530_s9 = sshll.u32 %s242_s7, 4  ;;  %s1064_s13 = scalar_lea.hbm %s1115_s5, %s628_s10  ;;  %s1059_s9 = int_to_ptr.vmem [resolvable:$true] %s530_s9 }
  0x3c   : > { %262 = vadd.xlane.f32.xlu0 %v261_v7  ;;  %v264_v11 = vadd.f32 %v1010_v9, %v1008_v8  ;;  %652 = vmatprep.mubr.msk.f32.mxu1 %vm358_vm2, %v245_v25  ;;  %v244_v26 = vld [vmem:[%s1112_s2] sm:$0xff]  ;;  %v247_v36 = vld [vmem:[%s1113_s3 + $0x10] sm:$0xff]  ;;  %v248_v37 = vld [vmem:[%s1113_s3 + $0x18] sm:$0xff]  ;;  %s517_s22 = scalar_lea.sflag [#allocation4], %s982_s23  ;;  %s770_s17 = scalar_lea.vmem %s1059_s9, 1024 }
  0x3d   : > { %v250_v39 = vld [vmem:[%s1114_s4 + $0x8] sm:$0xff]  ;;  %v249_v40 = vld [vmem:[%s1114_s4] sm:$0xff]  ;;  %v252_v45 = vld [vmem:[%s1114_s4 + $0x18] sm:$0xff]  ;;  %p771_p6 = scmp.ne.s32.totalorder %s1059_s9, %s770_s17  ;;  %p1122_p11 = scmp.ne.s32.totalorder %s1119_s30, 0 }
  0x3e   : > { %v251_v47 = vld [vmem:[%s1114_s4 + $0x10] sm:$0xff]  ;;  %s845_s26 = smov [#allocation5]  }
  0x3f   : > { %271 = vadd.xlane.f32.xlu1 %v270_v10  ;;  %p772_p12 = pnand %p771_p6, %p1122_p11  ;;  %s774_s28 = sshll.u32 %s845_s26, 4  ;;  %s775_s28 = int_to_ptr.vmem [resolvable:$false] %s774_s28 }
  0x40   : > { %265 = vadd.xlane.f32.xlu0 %v264_v11  ;;  %s776_s29 = scalar_lea.vmem %s775_s28, 2048  ;;  %p777_p8 = scmp.lt.s32.totalorder %s1059_s9, %s775_s28 }
  0x41   : > { %p773_p13 = pneg %p772_p12  ;;  %p778_p10 = scmp.lt.s32.totalorder %s776_s29, %s770_s17 }
  0x43   : > { %p779_p0 = por %p778_p10, %p777_p8 }
  0x45   : > { %p780_p2 = pnand %p779_p0, %p773_p13 }
  0xc8   : > { %v269_v14 = vpop.xlane.xlu1 %268 }
  0xc9   : > { %v263_v15 = vpop.xlane.xlu0 %262  ;;  %v275_v20 = vmul.f32 0.00390625, %v269_v14 }
  0xca   : > { %v273_v18 = vmul.f32 0.00390625, %v263_v15 }
  0xcc   : > { %v272_v16 = vpop.xlane.xlu1 %271 }
  0xcd   : > { %v266_v17 = vpop.xlane.xlu0 %265  ;;  %v276_v21 = vmul.f32 0.00390625, %v272_v16 }
  0xce   : > { %v274_v19 = vmul.f32 0.00390625, %v266_v17 }
  0xcf   : > { %v662_v23 = vpack.c.bf16 %v276_v21, %v275_v20 }
  0xd0   : > { %v659_v22 = vpack.c.bf16 %v274_v19, %v273_v18 }
  0xd2   : > { %660 = vmatpush3.bf16.msra.mxu0 %v659_v22 }
  0xd3   : > { %661 = vmatprep.subr.bf16.mxu0 %v841_v12 }
  0xd6   : > { %663 = vmatpush3.bf16.msra.mxu0 %v662_v23 }
  0xd9   : > { %648 = vmatmul.mubr.msk.f32.vlgmr.msra.gmra.mrb[0].mxu0 %vm277_vm1, %v243_v24 }
 0x1ac   : > { %v347_v27 = vpop.f32.mrb[0].mxu0 }
 0x1ad   : > { %v348_v28 = vadd.f32 %v347_v27, %v244_v26  ;;  %v649_v29 = vpop.f32.mrb[1].mxu0 }
 0x1af   : > { %v613_v30 = vmul.f32 -1.442695, %v348_v28 }
 0x1b1   : > { %720 = vpow2.f32 %v613_v30 }
 0x1bb   : > { %v721_v31 = vpop.eup %720 }
 0x1bc   : > { %v354_v32 = vadd.f32 1.0, %v721_v31 }
 0x1be   : > { %722 = vrcp.f32 %v354_v32 }
 0x1c8   : > { %v723_v33 = vpop.eup %722 }
 0x1c9   : > { %v357_v34 = vmul.f32 %v723_v33, %v348_v28 }
 0x1cb   : > { %650 = vmatprep.subr.mxu1 %v357_v34 }
 0x1cc   : > { %651 = vmatpush3.msra.mxu1 %v357_v34 }
 0x1cd   : > { %653 = vmatmul.mubr.msk.f32.vlgmr.msra.gmra.mrb[0].mxu1 %vm358_vm2, %v246_v35 }
 0x1ce   : > { %655 = vmatprep.mubr.msk.f32.mxu1 %vm358_vm2, %v247_v36 }
 0x1d1   : > { %656 = vmatmul.mubr.msk.f32.gmra.mrb[2].mxu1 %vm358_vm2, %v248_v37 }
 0x2a0   : > { %v654_v41 = vpop.f32.mrb[0].mxu1 }
 0x2a1   : > { %v443_v42 = vadd.f32 %v654_v41, %v250_v39  ;;  %v437_v43 = vpop.f32.mrb[1].mxu1 }
 0x2a2   : > { %v438_v44 = vadd.f32 %v437_v43, %v249_v40 }
 0x2a3   : > { %v619_v46 = vmul.f32 -1.442695, %v443_v42 }
 0x2a4   : > { %v618_v48 = vmul.f32 -1.442695, %v438_v44  ;;  %v657_v49 = vpop.f32.mrb[2].mxu1 }
 0x2a5   : > { %724 = vpow2.f32 %v619_v46  ;;  %v453_v50 = vadd.f32 %v657_v49, %v252_v45  ;;  %v447_v51 = vpop.f32.mrb[3].mxu1 }
 0x2a6   : > { %726 = vpow2.f32 %v618_v48  ;;  %v448_v52 = vadd.f32 %v447_v51, %v251_v47 }
 0x2a7   : > { %v621_v53 = vmul.f32 -1.442695, %v453_v50 }
 0x2a8   : > { %v620_v54 = vmul.f32 -1.442695, %v448_v52 }
 0x2a9   : > { %728 = vpow2.f32 %v621_v53 }
 0x2aa   : > { %730 = vpow2.f32 %v620_v54 }
 0x2af   : > { %v725_v55 = vpop.eup %724 }
 0x2b0   : > { %v727_v56 = vpop.eup %726  ;;  %v469_v57 = vadd.f32 1.0, %v725_v55 }
 0x2b1   : > { %v468_v58 = vadd.f32 1.0, %v727_v56 }
 0x2b2   : > { %732 = vrcp.f32 %v469_v57 }
 0x2b3   : > { %v729_v59 = vpop.eup %728  ;;  %734 = vrcp.f32 %v468_v58 }
 0x2b4   : > { %v731_v60 = vpop.eup %730  ;;  %v471_v62 = vadd.f32 1.0, %v729_v59 }
 0x2b5   : > { %v470_v61 = vadd.f32 1.0, %v731_v60 }
 0x2b7   : > { %736 = vrcp.f32 %v470_v61 }
 0x2b8   : > { %738 = vrcp.f32 %v471_v62 }
 0x2bc   : > { %v733_v63 = vpop.eup %732 }
 0x2bd   : > { %v735_v3 = vpop.eup %734  ;;  %487 = vperm.xlu1 %719, %v733_v63  }
 0x2be   : > { %482 = vperm.xlu0 %718, %v735_v3  }
 0x2c1   : > { %v737_v7 = vpop.eup %736 }
 0x2c2   : > { %492 = vperm.xlu1 %719, %v737_v7   ;;  %v739_v10 = vpop.eup %738 }
 0x2c6   : > { %497 = vperm.xlu1 %719, %v739_v10  }
 0x33c   : > { %v488_v11 = vpop.permute.xlu1 %487 }
 0x33d   : > { %v502_v12 = vmul.f32 %v488_v11, %v1008_v8  ;;  %v503_v13 = vmul.f32 %v488_v11, %v1010_v9  ;;  %v483_v14 = vpop.permute.xlu0 %482 }
 0x33e   : > { %v500_v15 = vmul.f32 %v483_v14, %v996_v2  ;;  %v501_v16 = vmul.f32 %v483_v14, %v1000_v4 }
 0x33f   : > { %510 = vst [vmem:[%s242_s7 + $0x10] sm:$0xff] %v502_v12  ;;  %511 = vst [vmem:[%s242_s7 + $0x18] sm:$0xff] %v503_v13 }
 0x340   : > { %508 = vst [vmem:[%s242_s7] sm:$0xff] %v500_v15  ;;  %509 = vst [vmem:[%s242_s7 + $0x8] sm:$0xff] %v501_v16 }
 0x341   : > { %v493_v17 = vpop.permute.xlu1 %492 }
 0x342   : > { %v504_v18 = vmul.f32 %v493_v17, %v992_v0  ;;  %v505_v8 = vmul.f32 %v493_v17, %v994_v1 }
 0x344   : > { %512 = vst [vmem:[%s242_s7 + $0x20] sm:$0xff] %v504_v18  ;;  %513 = vst [vmem:[%s242_s7 + $0x28] sm:$0xff] %v505_v8 }
 0x345   : > { %v498_v2 = vpop.permute.xlu1 %497 }
 0x346   : > { %v506_v4 = vmul.f32 %v498_v2, %v1002_v5  ;;  %v507_v0 = vmul.f32 %v498_v2, %v1004_v6 }
 0x348   : > { %514 = vst [vmem:[%s242_s7 + $0x30] sm:$0xff] %v506_v4  ;;  %515 = vst [vmem:[%s242_s7 + $0x38] sm:$0xff] %v507_v0 }
 0x349   : > { %783 = shalt.err (!%p780_p2)
}
 0x34a   : > { %s784_s12 = scalar_lea.hbm %s1064_s13, 1024  ;;  %s788_s16 = scalar_lea.hbm %s1115_s5, 2048 }
 0x34b   : > { %p785_p4 = scmp.ne.s32.totalorder %s1064_s13, %s784_s12  ;;  %p789_p9 = scmp.lt.u32.totalorder %s1064_s13, %s1115_s5 }
 0x34c   : > { %p790_p1 = scmp.lt.u32.totalorder %s788_s16, %s784_s12  ;;  %p792_p6 = scmp.lt.u32.totalorder %s784_s12, %s1064_s13 }
 0x34d   : > { %p786_p5 = pnand %p785_p4, %p1122_p11 }
 0x34e   : > { %p791_p3 = por %p790_p1, %p789_p9 }
 0x34f   : > { %p787_p7 = pneg %p786_p5 }
 0x350   : > { %p793_p12 = por %p792_p6, %p791_p3 }
 0x352   : > { %p794_p13 = pnand %p793_p12, %p787_p7 }
 0x354   : > { %797 = shalt.err (!%p794_p13)
}
 0x355   : > { %s846_s10 = smov 256   ;;  %s847_s25 = smov 16  }
 0x356   : > { %666 = dma.vmem_to_hbm [thread:$0]  (%p1122_p11), %s1059_s9, 1024, %s1064_s13, %s517_s22, %s846_s10, %s846_s10, %s847_s25  }
 0x357 PF: > { %s545_s11 = sand.u32 1, %s824_s18   ;;  %p1123_p8 = scmp.ne.s32.totalorder %s1120_s6, 0 }
 0x358   : > { %p1124_p10 = scmp.ge.s32.totalorder %s836_s21, 2  ;;  %s546_s17 = scalar_lea.sflag [#allocation4], %s545_s11 }
 0x35a   : > { %p673_p0 = pnand %p1124_p10, %p1123_p8 }
 0x35c   : > { %819 = dma.done.wait (!%p673_p0), %s546_s17, 1024  }
 0x35d   : > { %821 = vsyncadd (!%p673_p0), %s546_s17, 4294966272  ;;  %p18_p2 = scmp.ge.s32.totalorder %s903_s24, 4   ;;  %s1125_s18 = smov %s828_s19 }
 0x35e   : > { %s1126_s19 = smov %s832_s20  ;;  %s1127_s20 = smov %s915_s27 }
 0x35f   : > { %s1128_s21 = smov %s903_s24  ;;  %20 = sbr.rel (!%p18_p2) target bundleno = 5 (0x5), region = 85 }
 0x366   :  { %551 = vsyncpa [#allocation3], 1 }
 0x367   :  { %553 = vsyncpa [#allocation3 + $0x1], 1 }
 0x368   :  { %554 = vsyncpa [#allocation4], 1 }
 0x369   :  { %556 = vsyncpa [#allocation4 + $0x1], 1 }

</bundles_post_ra>
